<compile_context>
chip_gen: v7x
topology: tpu7x:2x2x1
jax: 0.10.0
libtpu: 0.0.40
codegen_flags: <defaults>
</compile_context>

<pallas_src>
import functools

import jax
import jax.numpy as jnp
from jax.experimental import pallas as pl
from jax.experimental.pallas import tpu as pltpu


# --------------------------------------------------------------------------
# Fused Pallas kernel: all RNN layers (wavefront) + final Linear
# --------------------------------------------------------------------------
def _fused_rnn_kernel(*refs, n_layers, T, Bp):
    """refs layout (positional):
      x_ref:                     (T*Bp, I)  time-major, batch-padded input (f32)
      for each layer l:          wih_t (in, H) bf16, whh_t (H, H) bf16,
                                 bias (1, H) f32  (b_ih + b_hh combined)
      fc_w_t:                    (H, Op) bf16   (Op = O padded to 128 lanes)
      fc_b:                      (1, Op) f32
      o_ref (output):            (Bp, Op) f32
    """
    x_ref = refs[0]
    w_refs = refs[1:1 + 3 * n_layers]
    fc_w_ref = refs[1 + 3 * n_layers]
    fc_b_ref = refs[2 + 3 * n_layers]
    o_ref = refs[3 + 3 * n_layers]

    H = w_refs[1].shape[1]

    # Load all weights once (tiny; they live in vregs for the whole kernel).
    wih = [w_refs[3 * l + 0][...] for l in range(n_layers)]    # bf16
    whh = [w_refs[3 * l + 1][...] for l in range(n_layers)]    # bf16
    bias = [w_refs[3 * l + 2][...] for l in range(n_layers)]   # f32 (1, H)

    # ---- hoisted layer-0 input projection over all timesteps (one MXU op,
    # off the serial critical path); kept in registers, (8,128)-aligned rows.
    x_bf16 = x_ref[...].astype(jnp.bfloat16)
    pre0 = jnp.dot(x_bf16, wih[0], preferred_element_type=jnp.float32) + bias[0]
    # pre0: (T*Bp, H) f32; rows [t*Bp, (t+1)*Bp) are timestep t (Bp == 8).

    # ---- wavefront over (layer, time): dependent chain of T + L - 1 steps.
    h = [jnp.zeros((Bp, H), jnp.float32) for _ in range(n_layers)]
    for s in range(T + n_layers - 1):          # static, fully unrolled
        h_prev = h                             # start-of-step snapshot
        h = list(h)
        for l in range(n_layers):
            t = s - l
            if t < 0 or t >= T:
                continue
            rec = jnp.dot(h_prev[l].astype(jnp.bfloat16), whh[l],
                          preferred_element_type=jnp.float32)
            if l == 0:
                pre = pre0[t * Bp:(t + 1) * Bp, :] + rec
            else:
                # layer l at time t consumes layer l-1's output at time t,
                # which h_prev[l-1] holds (produced at combined step s-1).
                inp = jnp.dot(h_prev[l - 1].astype(jnp.bfloat16), wih[l],
                              preferred_element_type=jnp.float32)
                pre = inp + bias[l] + rec
            h[l] = jnp.tanh(pre)

    # ---- final Linear on the last timestep of the last layer.
    y = jnp.dot(h[n_layers - 1].astype(jnp.bfloat16), fc_w_ref[...],
                preferred_element_type=jnp.float32) + fc_b_ref[...]
    o_ref[...] = y.astype(o_ref.dtype)         # lane-dense, unmasked store


# --------------------------------------------------------------------------
# Wrapper
# --------------------------------------------------------------------------
@jax.jit
def rnn_forward(x, kparams):
    """Equivalent of RNN.forward.  x: (B, T, input_size)  ->  (B, output_size)."""
    B, T, I = x.shape
    layers = kparams["layers"]
    n_layers = len(layers)
    O = kparams["fc_w_t"].shape[1]

    Bp = ((B + 7) // 8) * 8            # sublane-aligned batch
    Op = ((O + 127) // 128) * 128      # lane-dense output slab

    # (B,T,I) -> time-major, batch padded to the sublane tile, flattened.
    x_t = jnp.transpose(x, (1, 0, 2))                       # (T, B, I)
    x_t = jnp.pad(x_t, ((0, 0), (0, Bp - B), (0, 0)))       # (T, Bp, I)
    x_tb = x_t.reshape(T * Bp, I)

    # Lane-dense FC slab (zero-padded lanes; sliced off after the kernel).
    fc_w_t = jnp.pad(kparams["fc_w_t"], ((0, 0), (0, Op - O)))
    fc_b = jnp.pad(kparams["fc_b"], ((0, 0), (0, Op - O)))

    flat_args = [x_tb]
    in_specs = [pl.BlockSpec((T * Bp, I), lambda: (0, 0))]
    for layer in layers:
        for name in ("wih_t", "whh_t", "bias"):
            arr = layer[name]
            flat_args.append(arr)
            in_specs.append(pl.BlockSpec(arr.shape, lambda: (0, 0)))
    for arr in (fc_w_t, fc_b):
        flat_args.append(arr)
        in_specs.append(pl.BlockSpec(arr.shape, lambda: (0, 0)))

    # Size the scoped-VMEM limit from the actual resident footprint.
    vmem_bytes = sum(a.size * a.dtype.itemsize for a in flat_args) + Bp * Op * 4
    vmem_limit = max(4 * 1024 * 1024, 2 * int(vmem_bytes))

    kernel = functools.partial(_fused_rnn_kernel, n_layers=n_layers, T=T, Bp=Bp)

    y_pad = pl.pallas_call(
        kernel,
        out_shape=jax.ShapeDtypeStruct((Bp, Op), jnp.float32),
        in_specs=in_specs,
        out_specs=pl.BlockSpec((Bp, Op), lambda: (0, 0)),
        compiler_params=pltpu.CompilerParams(vmem_limit_bytes=vmem_limit),
    )(*flat_args)

    return y_pad[:B, :O]


# --------------------------------------------------------------------------
# Parameter handling
# --------------------------------------------------------------------------
def prepare_params(params, weight_dtype=jnp.bfloat16):
    """Convert PyTorch-layout params to kernel-ready form, once.

    Pre-transposes weights, combines the two RNN biases, and casts weights to
    bf16 for single-pass MXU matmuls (biases / accumulation stay f32).
    """
    layers = []
    for l in params["rnn_layers"]:
        layers.append({
            "wih_t": jnp.asarray(l["w_ih"].T, weight_dtype),           # (in, H)
            "whh_t": jnp.asarray(l["w_hh"].T, weight_dtype),           # (H, H)
            "bias": jnp.asarray((l["b_ih"] + l["b_hh"]).reshape(1, -1),
                                jnp.float32),                           # (1, H)
        })
    return {
        "layers": layers,
        "fc_w_t": jnp.asarray(params["fc_w"].T, weight_dtype),         # (H, O)
        "fc_b": jnp.asarray(params["fc_b"].reshape(1, -1), jnp.float32),
    }


def init_params(key, input_size, hidden_size, output_size, n_layers):
    """PyTorch-style U(-1/sqrt(H), 1/sqrt(H)) init."""
    bound = 1.0 / jnp.sqrt(jnp.float32(hidden_size))
    layers = []
    for l in range(n_layers):
        in_dim = input_size if l == 0 else hidden_size
        key, k1, k2, k3, k4 = jax.random.split(key, 5)
        layers.append({
            "w_ih": jax.random.uniform(k1, (hidden_size, in_dim),
                                       jnp.float32, -bound, bound),
            "w_hh": jax.random.uniform(k2, (hidden_size, hidden_size),
                                       jnp.float32, -bound, bound),
            "b_ih": jax.random.uniform(k3, (hidden_size,),
                                       jnp.float32, -bound, bound),
            "b_hh": jax.random.uniform(k4, (hidden_size,),
                                       jnp.float32, -bound, bound),
        })
    key, k1, k2 = jax.random.split(key, 3)
    return {
        "rnn_layers": layers,
        "fc_w": jax.random.uniform(k1, (output_size, hidden_size),
                                   jnp.float32, -bound, bound),
        "fc_b": jax.random.uniform(k2, (output_size,),
                                   jnp.float32, -bound, bound),
    }


# Pure-JAX f32 reference (same math as torch.nn.RNN(tanh) + Linear)
def rnn_forward_ref(x, params):
    B, T, _ = x.shape
    h_seq = x
    for layer in params["rnn_layers"]:
        H = layer["w_hh"].shape[0]
        h = jnp.zeros((B, H), jnp.float32)
        outs = []
        for t in range(T):
            h = jnp.tanh(h_seq[:, t, :] @ layer["w_ih"].T + layer["b_ih"]
                         + h @ layer["w_hh"].T + layer["b_hh"])
            outs.append(h)
        h_seq = jnp.stack(outs, axis=1)
    return h_seq[:, -1, :] @ params["fc_w"].T + params["fc_b"]


if __name__ == "__main__":
    B, T = 2, 8
    input_size, hidden_size, output_size, n_layers = 16, 32, 4, 2

    key = jax.random.PRNGKey(0)
    key, kp, kx = jax.random.split(key, 3)
    params = init_params(kp, input_size, hidden_size, output_size, n_layers)
    kparams = prepare_params(params)   # transpose / combine bias / bf16, once
    x = jax.random.normal(kx, (B, T, input_size), jnp.float32)

    y = jax.block_until_ready(rnn_forward(x, kparams))
    y_ref = rnn_forward_ref(x, params)

    assert y.shape == (B, output_size)
    # Kernel uses bf16 MXU operands (f32 accumulation), so compare against the
    # f32 reference with a correspondingly loose tolerance.
    err = float(jnp.max(jnp.abs(y - y_ref)))
    assert err < 5e-2, (err, y, y_ref)

    print("KERNEL_OK")
</pallas_src>

<mosaic_0001>
module attributes {stable_mosaic.version = 11 : i64} {
  func.func @_fused_rnn_kernel(%arg0: memref<64x16xf32, #tpu.memory_space<vmem>>, %arg1: memref<16x32xbf16, #tpu.memory_space<vmem>>, %arg2: memref<32x32xbf16, #tpu.memory_space<vmem>>, %arg3: memref<1x32xf32, #tpu.memory_space<vmem>>, %arg4: memref<32x32xbf16, #tpu.memory_space<vmem>>, %arg5: memref<32x32xbf16, #tpu.memory_space<vmem>>, %arg6: memref<1x32xf32, #tpu.memory_space<vmem>>, %arg7: memref<32x128xbf16, #tpu.memory_space<vmem>>, %arg8: memref<1x128xf32, #tpu.memory_space<vmem>>, %arg9: memref<8x128xf32, #tpu.memory_space<vmem>>) attributes {dimension_semantics = [], scalar_prefetch = 0 : i64, scratch_operands = 0 : i64, tpu.core_type = #tpu.core_type<tc>} {
    %c0 = arith.constant 0 : index
    %c0_0 = arith.constant 0 : index
    %0 = vector.load %arg1[%c0, %c0_0] : memref<16x32xbf16, #tpu.memory_space<vmem>>, vector<16x32xbf16>
    %c0_1 = arith.constant 0 : index
    %c0_2 = arith.constant 0 : index
    %1 = vector.load %arg4[%c0_1, %c0_2] : memref<32x32xbf16, #tpu.memory_space<vmem>>, vector<32x32xbf16>
    %c0_3 = arith.constant 0 : index
    %c0_4 = arith.constant 0 : index
    %2 = vector.load %arg2[%c0_3, %c0_4] : memref<32x32xbf16, #tpu.memory_space<vmem>>, vector<32x32xbf16>
    %c0_5 = arith.constant 0 : index
    %c0_6 = arith.constant 0 : index
    %3 = vector.load %arg5[%c0_5, %c0_6] : memref<32x32xbf16, #tpu.memory_space<vmem>>, vector<32x32xbf16>
    %c0_7 = arith.constant 0 : index
    %c0_8 = arith.constant 0 : index
    %4 = vector.load %arg3[%c0_7, %c0_8] : memref<1x32xf32, #tpu.memory_space<vmem>>, vector<1x32xf32>
    %c0_9 = arith.constant 0 : index
    %c0_10 = arith.constant 0 : index
    %5 = vector.load %arg6[%c0_9, %c0_10] : memref<1x32xf32, #tpu.memory_space<vmem>>, vector<1x32xf32>
    %c0_11 = arith.constant 0 : index
    %c0_12 = arith.constant 0 : index
    %6 = vector.load %arg0[%c0_11, %c0_12] : memref<64x16xf32, #tpu.memory_space<vmem>>, vector<64x16xf32>
    %7 = arith.truncf %6 : vector<64x16xf32> to vector<64x16xbf16>
    %cst = arith.constant dense<0.000000e+00> : vector<64x32xf32>
    %8 = tpu.matmul %7, %0, %cst {dimension_numbers = #tpu.dot_dimension_numbers<[1], [0], [0], [1], [0, 0, 1, 1], [], []>} : vector<64x16xbf16>, vector<16x32xbf16>, vector<64x32xf32> -> vector<64x32xf32>
    %9 = vector.broadcast %4 : vector<1x32xf32> to vector<64x32xf32>
    %10 = arith.addf %8, %9 : vector<64x32xf32>
    %cst_13 = arith.constant 0.000000e+00 : f32
    %11 = vector.broadcast %cst_13 : f32 to vector<8x32xf32>
    %cst_14 = arith.constant 0.000000e+00 : f32
    %12 = vector.broadcast %cst_14 : f32 to vector<8x32xf32>
    %13 = arith.truncf %11 : vector<8x32xf32> to vector<8x32xbf16>
    %cst_15 = arith.constant dense<0.000000e+00> : vector<8x32xf32>
    %14 = tpu.matmul %13, %2, %cst_15 {dimension_numbers = #tpu.dot_dimension_numbers<[1], [0], [0], [1], [0, 0, 1, 1], [], []>} : vector<8x32xbf16>, vector<32x32xbf16>, vector<8x32xf32> -> vector<8x32xf32>
    %15 = vector.extract_strided_slice %10 {offsets = [0, 0], sizes = [8, 32], strides = [1, 1]} : vector<64x32xf32> to vector<8x32xf32>
    %16 = arith.addf %15, %14 : vector<8x32xf32>
    %17 = math.tanh %16 : vector<8x32xf32>
    %18 = arith.truncf %17 : vector<8x32xf32> to vector<8x32xbf16>
    %cst_16 = arith.constant dense<0.000000e+00> : vector<8x32xf32>
    %19 = tpu.matmul %18, %2, %cst_16 {dimension_numbers = #tpu.dot_dimension_numbers<[1], [0], [0], [1], [0, 0, 1, 1], [], []>} : vector<8x32xbf16>, vector<32x32xbf16>, vector<8x32xf32> -> vector<8x32xf32>
    %20 = vector.extract_strided_slice %10 {offsets = [8, 0], sizes = [8, 32], strides = [1, 1]} : vector<64x32xf32> to vector<8x32xf32>
    %21 = arith.addf %20, %19 : vector<8x32xf32>
    %22 = math.tanh %21 : vector<8x32xf32>
    %23 = arith.truncf %12 : vector<8x32xf32> to vector<8x32xbf16>
    %cst_17 = arith.constant dense<0.000000e+00> : vector<8x32xf32>
    %24 = tpu.matmul %23, %3, %cst_17 {dimension_numbers = #tpu.dot_dimension_numbers<[1], [0], [0], [1], [0, 0, 1, 1], [], []>} : vector<8x32xbf16>, vector<32x32xbf16>, vector<8x32xf32> -> vector<8x32xf32>
    %25 = arith.truncf %17 : vector<8x32xf32> to vector<8x32xbf16>
    %cst_18 = arith.constant dense<0.000000e+00> : vector<8x32xf32>
    %26 = tpu.matmul %25, %1, %cst_18 {dimension_numbers = #tpu.dot_dimension_numbers<[1], [0], [0], [1], [0, 0, 1, 1], [], []>} : vector<8x32xbf16>, vector<32x32xbf16>, vector<8x32xf32> -> vector<8x32xf32>
    %27 = vector.broadcast %5 : vector<1x32xf32> to vector<8x32xf32>
    %28 = arith.addf %26, %27 : vector<8x32xf32>
    %29 = arith.addf %28, %24 : vector<8x32xf32>
    %30 = math.tanh %29 : vector<8x32xf32>
    %31 = arith.truncf %22 : vector<8x32xf32> to vector<8x32xbf16>
    %cst_19 = arith.constant dense<0.000000e+00> : vector<8x32xf32>
    %32 = tpu.matmul %31, %2, %cst_19 {dimension_numbers = #tpu.dot_dimension_numbers<[1], [0], [0], [1], [0, 0, 1, 1], [], []>} : vector<8x32xbf16>, vector<32x32xbf16>, vector<8x32xf32> -> vector<8x32xf32>
    %33 = vector.extract_strided_slice %10 {offsets = [16, 0], sizes = [8, 32], strides = [1, 1]} : vector<64x32xf32> to vector<8x32xf32>
    %34 = arith.addf %33, %32 : vector<8x32xf32>
    %35 = math.tanh %34 : vector<8x32xf32>
    %36 = arith.truncf %30 : vector<8x32xf32> to vector<8x32xbf16>
    %cst_20 = arith.constant dense<0.000000e+00> : vector<8x32xf32>
    %37 = tpu.matmul %36, %3, %cst_20 {dimension_numbers = #tpu.dot_dimension_numbers<[1], [0], [0], [1], [0, 0, 1, 1], [], []>} : vector<8x32xbf16>, vector<32x32xbf16>, vector<8x32xf32> -> vector<8x32xf32>
    %38 = arith.truncf %22 : vector<8x32xf32> to vector<8x32xbf16>
    %cst_21 = arith.constant dense<0.000000e+00> : vector<8x32xf32>
    %39 = tpu.matmul %38, %1, %cst_21 {dimension_numbers = #tpu.dot_dimension_numbers<[1], [0], [0], [1], [0, 0, 1, 1], [], []>} : vector<8x32xbf16>, vector<32x32xbf16>, vector<8x32xf32> -> vector<8x32xf32>
    %40 = vector.broadcast %5 : vector<1x32xf32> to vector<8x32xf32>
    %41 = arith.addf %39, %40 : vector<8x32xf32>
    %42 = arith.addf %41, %37 : vector<8x32xf32>
    %43 = math.tanh %42 : vector<8x32xf32>
    %44 = arith.truncf %35 : vector<8x32xf32> to vector<8x32xbf16>
    %cst_22 = arith.constant dense<0.000000e+00> : vector<8x32xf32>
    %45 = tpu.matmul %44, %2, %cst_22 {dimension_numbers = #tpu.dot_dimension_numbers<[1], [0], [0], [1], [0, 0, 1, 1], [], []>} : vector<8x32xbf16>, vector<32x32xbf16>, vector<8x32xf32> -> vector<8x32xf32>
    %46 = vector.extract_strided_slice %10 {offsets = [24, 0], sizes = [8, 32], strides = [1, 1]} : vector<64x32xf32> to vector<8x32xf32>
    %47 = arith.addf %46, %45 : vector<8x32xf32>
    %48 = math.tanh %47 : vector<8x32xf32>
    %49 = arith.truncf %43 : vector<8x32xf32> to vector<8x32xbf16>
    %cst_23 = arith.constant dense<0.000000e+00> : vector<8x32xf32>
    %50 = tpu.matmul %49, %3, %cst_23 {dimension_numbers = #tpu.dot_dimension_numbers<[1], [0], [0], [1], [0, 0, 1, 1], [], []>} : vector<8x32xbf16>, vector<32x32xbf16>, vector<8x32xf32> -> vector<8x32xf32>
    %51 = arith.truncf %35 : vector<8x32xf32> to vector<8x32xbf16>
    %cst_24 = arith.constant dense<0.000000e+00> : vector<8x32xf32>
    %52 = tpu.matmul %51, %1, %cst_24 {dimension_numbers = #tpu.dot_dimension_numbers<[1], [0], [0], [1], [0, 0, 1, 1], [], []>} : vector<8x32xbf16>, vector<32x32xbf16>, vector<8x32xf32> -> vector<8x32xf32>
    %53 = vector.broadcast %5 : vector<1x32xf32> to vector<8x32xf32>
    %54 = arith.addf %52, %53 : vector<8x32xf32>
    %55 = arith.addf %54, %50 : vector<8x32xf32>
    %56 = math.tanh %55 : vector<8x32xf32>
    %57 = arith.truncf %48 : vector<8x32xf32> to vector<8x32xbf16>
    %cst_25 = arith.constant dense<0.000000e+00> : vector<8x32xf32>
    %58 = tpu.matmul %57, %2, %cst_25 {dimension_numbers = #tpu.dot_dimension_numbers<[1], [0], [0], [1], [0, 0, 1, 1], [], []>} : vector<8x32xbf16>, vector<32x32xbf16>, vector<8x32xf32> -> vector<8x32xf32>
    %59 = vector.extract_strided_slice %10 {offsets = [32, 0], sizes = [8, 32], strides = [1, 1]} : vector<64x32xf32> to vector<8x32xf32>
    %60 = arith.addf %59, %58 : vector<8x32xf32>
    %61 = math.tanh %60 : vector<8x32xf32>
    %62 = arith.truncf %56 : vector<8x32xf32> to vector<8x32xbf16>
    %cst_26 = arith.constant dense<0.000000e+00> : vector<8x32xf32>
    %63 = tpu.matmul %62, %3, %cst_26 {dimension_numbers = #tpu.dot_dimension_numbers<[1], [0], [0], [1], [0, 0, 1, 1], [], []>} : vector<8x32xbf16>, vector<32x32xbf16>, vector<8x32xf32> -> vector<8x32xf32>
    %64 = arith.truncf %48 : vector<8x32xf32> to vector<8x32xbf16>
    %cst_27 = arith.constant dense<0.000000e+00> : vector<8x32xf32>
    %65 = tpu.matmul %64, %1, %cst_27 {dimension_numbers = #tpu.dot_dimension_numbers<[1], [0], [0], [1], [0, 0, 1, 1], [], []>} : vector<8x32xbf16>, vector<32x32xbf16>, vector<8x32xf32> -> vector<8x32xf32>
    %66 = vector.broadcast %5 : vector<1x32xf32> to vector<8x32xf32>
    %67 = arith.addf %65, %66 : vector<8x32xf32>
    %68 = arith.addf %67, %63 : vector<8x32xf32>
    %69 = math.tanh %68 : vector<8x32xf32>
    %70 = arith.truncf %61 : vector<8x32xf32> to vector<8x32xbf16>
    %cst_28 = arith.constant dense<0.000000e+00> : vector<8x32xf32>
    %71 = tpu.matmul %70, %2, %cst_28 {dimension_numbers = #tpu.dot_dimension_numbers<[1], [0], [0], [1], [0, 0, 1, 1], [], []>} : vector<8x32xbf16>, vector<32x32xbf16>, vector<8x32xf32> -> vector<8x32xf32>
    %72 = vector.extract_strided_slice %10 {offsets = [40, 0], sizes = [8, 32], strides = [1, 1]} : vector<64x32xf32> to vector<8x32xf32>
    %73 = arith.addf %72, %71 : vector<8x32xf32>
    %74 = math.tanh %73 : vector<8x32xf32>
    %75 = arith.truncf %69 : vector<8x32xf32> to vector<8x32xbf16>
    %cst_29 = arith.constant dense<0.000000e+00> : vector<8x32xf32>
    %76 = tpu.matmul %75, %3, %cst_29 {dimension_numbers = #tpu.dot_dimension_numbers<[1], [0], [0], [1], [0, 0, 1, 1], [], []>} : vector<8x32xbf16>, vector<32x32xbf16>, vector<8x32xf32> -> vector<8x32xf32>
    %77 = arith.truncf %61 : vector<8x32xf32> to vector<8x32xbf16>
    %cst_30 = arith.constant dense<0.000000e+00> : vector<8x32xf32>
    %78 = tpu.matmul %77, %1, %cst_30 {dimension_numbers = #tpu.dot_dimension_numbers<[1], [0], [0], [1], [0, 0, 1, 1], [], []>} : vector<8x32xbf16>, vector<32x32xbf16>, vector<8x32xf32> -> vector<8x32xf32>
    %79 = vector.broadcast %5 : vector<1x32xf32> to vector<8x32xf32>
    %80 = arith.addf %78, %79 : vector<8x32xf32>
    %81 = arith.addf %80, %76 : vector<8x32xf32>
    %82 = math.tanh %81 : vector<8x32xf32>
    %83 = arith.truncf %74 : vector<8x32xf32> to vector<8x32xbf16>
    %cst_31 = arith.constant dense<0.000000e+00> : vector<8x32xf32>
    %84 = tpu.matmul %83, %2, %cst_31 {dimension_numbers = #tpu.dot_dimension_numbers<[1], [0], [0], [1], [0, 0, 1, 1], [], []>} : vector<8x32xbf16>, vector<32x32xbf16>, vector<8x32xf32> -> vector<8x32xf32>
    %85 = vector.extract_strided_slice %10 {offsets = [48, 0], sizes = [8, 32], strides = [1, 1]} : vector<64x32xf32> to vector<8x32xf32>
    %86 = arith.addf %85, %84 : vector<8x32xf32>
    %87 = math.tanh %86 : vector<8x32xf32>
    %88 = arith.truncf %82 : vector<8x32xf32> to vector<8x32xbf16>
    %cst_32 = arith.constant dense<0.000000e+00> : vector<8x32xf32>
    %89 = tpu.matmul %88, %3, %cst_32 {dimension_numbers = #tpu.dot_dimension_numbers<[1], [0], [0], [1], [0, 0, 1, 1], [], []>} : vector<8x32xbf16>, vector<32x32xbf16>, vector<8x32xf32> -> vector<8x32xf32>
    %90 = arith.truncf %74 : vector<8x32xf32> to vector<8x32xbf16>
    %cst_33 = arith.constant dense<0.000000e+00> : vector<8x32xf32>
    %91 = tpu.matmul %90, %1, %cst_33 {dimension_numbers = #tpu.dot_dimension_numbers<[1], [0], [0], [1], [0, 0, 1, 1], [], []>} : vector<8x32xbf16>, vector<32x32xbf16>, vector<8x32xf32> -> vector<8x32xf32>
    %92 = vector.broadcast %5 : vector<1x32xf32> to vector<8x32xf32>
    %93 = arith.addf %91, %92 : vector<8x32xf32>
    %94 = arith.addf %93, %89 : vector<8x32xf32>
    %95 = math.tanh %94 : vector<8x32xf32>
    %96 = arith.truncf %87 : vector<8x32xf32> to vector<8x32xbf16>
    %cst_34 = arith.constant dense<0.000000e+00> : vector<8x32xf32>
    %97 = tpu.matmul %96, %2, %cst_34 {dimension_numbers = #tpu.dot_dimension_numbers<[1], [0], [0], [1], [0, 0, 1, 1], [], []>} : vector<8x32xbf16>, vector<32x32xbf16>, vector<8x32xf32> -> vector<8x32xf32>
    %98 = vector.extract_strided_slice %10 {offsets = [56, 0], sizes = [8, 32], strides = [1, 1]} : vector<64x32xf32> to vector<8x32xf32>
    %99 = arith.addf %98, %97 : vector<8x32xf32>
    %100 = math.tanh %99 : vector<8x32xf32>
    %101 = arith.truncf %95 : vector<8x32xf32> to vector<8x32xbf16>
    %cst_35 = arith.constant dense<0.000000e+00> : vector<8x32xf32>
    %102 = tpu.matmul %101, %3, %cst_35 {dimension_numbers = #tpu.dot_dimension_numbers<[1], [0], [0], [1], [0, 0, 1, 1], [], []>} : vector<8x32xbf16>, vector<32x32xbf16>, vector<8x32xf32> -> vector<8x32xf32>
    %103 = arith.truncf %87 : vector<8x32xf32> to vector<8x32xbf16>
    %cst_36 = arith.constant dense<0.000000e+00> : vector<8x32xf32>
    %104 = tpu.matmul %103, %1, %cst_36 {dimension_numbers = #tpu.dot_dimension_numbers<[1], [0], [0], [1], [0, 0, 1, 1], [], []>} : vector<8x32xbf16>, vector<32x32xbf16>, vector<8x32xf32> -> vector<8x32xf32>
    %105 = vector.broadcast %5 : vector<1x32xf32> to vector<8x32xf32>
    %106 = arith.addf %104, %105 : vector<8x32xf32>
    %107 = arith.addf %106, %102 : vector<8x32xf32>
    %108 = math.tanh %107 : vector<8x32xf32>
    %109 = arith.truncf %108 : vector<8x32xf32> to vector<8x32xbf16>
    %cst_37 = arith.constant dense<0.000000e+00> : vector<8x32xf32>
    %110 = tpu.matmul %109, %3, %cst_37 {dimension_numbers = #tpu.dot_dimension_numbers<[1], [0], [0], [1], [0, 0, 1, 1], [], []>} : vector<8x32xbf16>, vector<32x32xbf16>, vector<8x32xf32> -> vector<8x32xf32>
    %111 = arith.truncf %100 : vector<8x32xf32> to vector<8x32xbf16>
    %cst_38 = arith.constant dense<0.000000e+00> : vector<8x32xf32>
    %112 = tpu.matmul %111, %1, %cst_38 {dimension_numbers = #tpu.dot_dimension_numbers<[1], [0], [0], [1], [0, 0, 1, 1], [], []>} : vector<8x32xbf16>, vector<32x32xbf16>, vector<8x32xf32> -> vector<8x32xf32>
    %113 = vector.broadcast %5 : vector<1x32xf32> to vector<8x32xf32>
    %114 = arith.addf %112, %113 : vector<8x32xf32>
    %115 = arith.addf %114, %110 : vector<8x32xf32>
    %116 = math.tanh %115 : vector<8x32xf32>
    %117 = arith.truncf %116 : vector<8x32xf32> to vector<8x32xbf16>
    %c0_39 = arith.constant 0 : index
    %c0_40 = arith.constant 0 : index
    %118 = vector.load %arg7[%c0_39, %c0_40] : memref<32x128xbf16, #tpu.memory_space<vmem>>, vector<32x128xbf16>
    %cst_41 = arith.constant dense<0.000000e+00> : vector<8x128xf32>
    %119 = tpu.matmul %117, %118, %cst_41 {dimension_numbers = #tpu.dot_dimension_numbers<[1], [0], [0], [1], [0, 0, 1, 1], [], []>} : vector<8x32xbf16>, vector<32x128xbf16>, vector<8x128xf32> -> vector<8x128xf32>
    %c0_42 = arith.constant 0 : index
    %c0_43 = arith.constant 0 : index
    %120 = vector.load %arg8[%c0_42, %c0_43] : memref<1x128xf32, #tpu.memory_space<vmem>>, vector<1x128xf32>
    %121 = vector.broadcast %120 : vector<1x128xf32> to vector<8x128xf32>
    %122 = arith.addf %119, %121 : vector<8x128xf32>
    %c0_44 = arith.constant 0 : index
    %c0_45 = arith.constant 0 : index
    %123 = vector.load %arg9[%c0_44, %c0_45] : memref<8x128xf32, #tpu.memory_space<vmem>>, vector<8x128xf32>
    tpu.vector_store %arg9[%c0_44, %c0_45], %122 {strides = array<i32>} : memref<8x128xf32, #tpu.memory_space<vmem>>, vector<8x128xf32>,
    return
  }
}

</mosaic_0001>

<bundles_post_ra>
// kernel: rnn_forward.1
= control target key start
LH: loop header
LB: loop body
LE: loop exit
PB: predicated region body
PF: predicated region fallthrough
CT: control target
= control target key end

     0   :  { %v1734_v0 = vmov 0.0   ;;  %vm1735_vm0 = vmmov 0   ;;  %vm73_vm1 = vcmask 130048   ;;  %v1736_v16 = vmov 0   ;;  %s2065_s1 = inlined_call_operand.vmem [shape: bf16[16,32], index: 1, kind: input, shape index: {}]   ;;  %s2066_s2 = inlined_call_operand.vmem [shape: bf16[32,32], index: 2, kind: input, shape index: {}]   ;;  %s2067_s0 = inlined_call_operand.vmem [shape: f32[64,16], index: 0, kind: input, shape index: {}]   ;;  %s2068_s5 = inlined_call_operand.vmem [shape: bf16[32,32], index: 5, kind: input, shape index: {}]   ;;  %s2069_s4 = inlined_call_operand.vmem [shape: bf16[32,32], index: 4, kind: input, shape index: {}]   ;;  %s2070_s3 = inlined_call_operand.vmem [shape: f32[1,32], index: 3, kind: input, shape index: {}]   ;;  %s2071_s6 = inlined_call_operand.vmem [shape: f32[1,32], index: 6, kind: input, shape index: {}]   ;;  %s2072_s7 = inlined_call_operand.vmem [shape: bf16[32,128], index: 7, kind: input, shape index: {}]   ;;  %s2073_s8 = inlined_call_operand.vmem [shape: f32[1,128], index: 8, kind: input, shape index: {}]   ;;  %s2074_s9 = inlined_call_operand.vmem [shape: f32[8,128], index: 9, kind: output, shape index: {}]  }
   0x1   :  { %1450 = vmatprep.subr.bf16.mxu1 %v1734_v0  ;;  %v1693_v1 = vld [vmem:[%s2065_s1] sm:$0xff]   ;;  %1454 = vmatprep.mubr.msk.bf16.mxu1 %vm1735_vm0, %v1734_v0  ;;  %v50_v4 = vld [vmem:[%s2067_s0 + $0x8] sm:$0xff]  ;;  %v51_v5 = vld [vmem:[%s2067_s0 + $0x10] sm:$0xff]  ;;  %vm163_vm2 = vcmask 261120  }
   0x2   :  { %v1796_v2 = vld [vmem:[%s2066_s2] sm:$0xff]   ;;  %1440 = vmatprep.subr.bf16.mxu0 %v1693_v1  ;;  %v52_v7 = vld [vmem:[%s2067_s0 + $0x18] sm:$0xff]  ;;  %v1815_v9 = vld [vmem:[%s2066_s2 + $0x8] sm:$0xff]  }
   0x3   :  { %v49_v3 = vld [vmem:[%s2067_s0] sm:$0xff]  ;;  %1451 = vmatpush3.bf16.msra.mxu1 %v1796_v2  ;;  %1441 = vmatpush3.bf16.msra.mxu0 %v1693_v1  ;;  %v58_v8 = vpack.c.bf16 %v52_v7, %v51_v5  ;;  %v54_v11 = vld [vmem:[%s2067_s0 + $0x28] sm:$0xff]  ;;  %v55_v14 = vld [vmem:[%s2067_s0 + $0x30] sm:$0xff] }
   0x4   :  { %v57_v6 = vpack.c.bf16 %v50_v4, %v49_v3  ;;  %1452 = vmatprep.subr.bf16.mxu1 %v1734_v0  ;;  %v53_v10 = vld [vmem:[%s2067_s0 + $0x20] sm:$0xff]  ;;  %1466 = vmatprep.subr.bf16.mxu0 %v1734_v0  ;;  %v56_v15 = vld [vmem:[%s2067_s0 + $0x38] sm:$0xff]  ;;  %v1854_v18 = vld [vmem:[%s2068_s5 + $0x8] sm:$0xff]  }
   0x5   :  { %v59_v12 = vpack.c.bf16 %v54_v11, %v53_v10  ;;  %v1829_v13 = vld [vmem:[%s2068_s5] sm:$0xff]   ;;  %v60_v17 = vpack.c.bf16 %v56_v15, %v55_v14  ;;  %v1870_v20 = vld [vmem:[%s2069_s4 + $0x8] sm:$0xff]  }
   0x6   :  { %1442 = vmatprep.mubr.msk.bf16.mxu0 %vm73_vm1, %v57_v6  ;;  %v1863_v19 = vld [vmem:[%s2069_s4] sm:$0xff]  }
   0x7   :  { %1443 = vmatmul.mubr.msk.bf16.vlgmr.msra.gmra.mrb[0].mxu0 %vm73_vm1, %v58_v8  ;;  %1453 = vmatpush3.bf16.msra.mxu1 %v1815_v9  ;;  %v1321_v21 = vld [vmem:[%s2070_s3] ss:$0 sm:$0xff] }
   0x8   :  { %1446 = vmatprep.mubr.msk.bf16.mxu0 %vm73_vm1, %v59_v12  ;;  %1467 = vmatpush3.bf16.msra.mxu0 %v1829_v13  ;;  %v1906_v50 = vld [vmem:[%s2071_s6] ss:$0 sm:$0xff] }
   0x9   :  { %1458 = vmatprep.subr.bf16.mxu1 %v1734_v0  ;;  %1468 = vmatprep.subr.bf16.mxu0 %v1734_v0 }
   0xa   :  { %1455 = vmatmul.mubr.bf16.vlgmr.msra.gmra.mrb[0].mxu1 %v1736_v16 }
   0xb   :  { %1459 = vmatpush3.bf16.msra.mxu1 %v1796_v2  ;;  %1462 = vmatprep.mubr.msk.bf16.mxu1 %vm1735_vm0, %v1734_v0 }
   0xc   :  { %1460 = vmatprep.subr.bf16.mxu1 %v1734_v0  ;;  %1469 = vmatpush3.bf16.msra.mxu0 %v1854_v18 }
   0xd   :  { %1474 = vmatprep.subr.bf16.mxu0 %v1734_v0 }
   0xf   :  { %1447 = vmatmul.mubr.msk.bf16.gmra.mrb[4].mxu0 %vm73_vm1, %v60_v17  ;;  %1461 = vmatpush3.bf16.msra.mxu1 %v1815_v9 }
  0x10   :  { %1470 = vmatprep.mubr.msk.bf16.mxu0 %vm1735_vm0, %v1734_v0  ;;  %1482 = vmatprep.subr.bf16.mxu1 %v1734_v0 }
  0x17   :  { %1471 = vmatmul.mubr.bf16.vlgmr.msra.gmra.mrb[8].mxu0 %v1736_v16 }
  0x18   :  { %1478 = vmatprep.mubr.msk.bf16.mxu0 %vm1735_vm0, %v1734_v0  ;;  %1475 = vmatpush3.bf16.msra.mxu0 %v1863_v19 }
  0x19   :  { %1476 = vmatprep.subr.bf16.mxu0 %v1734_v0 }
  0x1c   :  { %1477 = vmatpush3.bf16.msra.mxu0 %v1870_v20 }
  0x1d   :  { %1506 = vmatprep.subr.bf16.mxu0 %v1734_v0 }
  0xda   :  { %v1444_v22 = vpop.f32.mrb[0].mxu0 }
  0xdb   :  { %v1877_v23 = vadd.f32 %v1444_v22, %v1321_v21  ;;  %v120_v24 = vpop.f32.mrb[1].mxu0 }
  0xdc   :  { %v121_v25 = vadd.f32 %v1321_v21, %v120_v24  ;;  %v1445_v26 = vpop.f32.mrb[2].mxu0 }
  0xdd   :  { %v1879_v27 = vadd.f32 %v1445_v26, %v1321_v21  ;;  %v123_v28 = vpop.f32.mrb[3].mxu0  ;;  %v201_v30 = vpop.f32.mrb[0].mxu1 }
  0xde   :  { %v124_v29 = vadd.f32 %v1321_v21, %v123_v28  ;;  %v207_v31 = vadd.f32 %v201_v30, %v121_v25  ;;  %v1456_v32 = vpop.f32.mrb[1].mxu1 }
  0xdf   :  { %v204_v33 = vpop.f32.mrb[2].mxu1 }
  0xe0   :  { %1702 = vtanh.f32 %v207_v31  ;;  %v1457_v34 = vpop.f32.mrb[3].mxu1 }
  0xe2   :  { %v1448_v35 = vpop.f32.mrb[4].mxu0 }
  0xe3   :  { %v1881_v36 = vadd.f32 %v1448_v35, %v1321_v21  ;;  %v136_v37 = vpop.f32.mrb[5].mxu0 }
  0xe4   :  { %v1883_v38 = vadd.f32 %v1321_v21, %v136_v37  ;;  %v1449_v39 = vpop.f32.mrb[6].mxu0 }
  0xe5   :  { %v1885_v40 = vadd.f32 %v1449_v39, %v1321_v21  ;;  %v139_v41 = vpop.f32.mrb[7].mxu0 }
  0xe6   :  { %v1887_v42 = vadd.f32 %v1321_v21, %v139_v41 }
  0xea   :  { %v1703_v43 = vpop.eup %1702 }
  0xeb   :  { %v209_v44 = vpack.c.bf16 %v1703_v43, %v1703_v43 }
  0xed   :  { %1463 = vmatmul.mubr.msk.bf16.vlgmr.msra.gmra.mrb[4].mxu1 %vm163_vm2, %v209_v44  ;;  %1479 = vmatmul.mubr.msk.bf16.vlgmr.msra.gmra.mrb[8].mxu0 %vm163_vm2, %v209_v44 }
  0xee   :  { %1483 = vmatpush3.bf16.msra.mxu1 %v1796_v2  ;;  %1486 = vmatprep.mubr.msk.bf16.mxu1 %vm1735_vm0, %v1734_v0 }
  0xef   :  { %1484 = vmatprep.subr.bf16.mxu1 %v1734_v0  ;;  %1507 = vmatpush3.bf16.msra.mxu0 %v1796_v2 }
  0xf0   :  { %1508 = vmatprep.subr.bf16.mxu0 %v1734_v0  ;;  %1510 = vmatprep.mubr.msk.bf16.mxu0 %vm1735_vm0, %v1734_v0 }
  0xf2   :  { %1485 = vmatpush3.bf16.msra.mxu1 %v1815_v9 }
  0xf3   :  { %1490 = vmatprep.subr.bf16.mxu1 %v1734_v0  ;;  %1509 = vmatpush3.bf16.msra.mxu0 %v1815_v9 }
  0xf4   :  { %1514 = vmatprep.subr.bf16.mxu0 %v1734_v0 }
 0x1c0   :  { %v247_v45 = vpop.f32.mrb[4].mxu1  ;;  %v359_v46 = vpop.f32.mrb[8].mxu0 }
 0x1c1   :  { %v253_v47 = vadd.f32 %v247_v45, %v124_v29  ;;  %v1464_v48 = vpop.f32.mrb[5].mxu1  ;;  %v1480_v49 = vpop.f32.mrb[9].mxu0  ;;  %v360_v55 = vadd.f32 %v1906_v50, %v359_v46 }
 0x1c2   :  { %v250_v51 = vpop.f32.mrb[6].mxu1  ;;  %v362_v52 = vpop.f32.mrb[10].mxu0 }
 0x1c3   :  { %1704 = vtanh.f32 %v253_v47  ;;  %v1465_v53 = vpop.f32.mrb[7].mxu1  ;;  %v1481_v54 = vpop.f32.mrb[11].mxu0 }
 0x1c4   :  { %1706 = vtanh.f32 %v360_v55 }
 0x1cd   :  { %v1705_v56 = vpop.eup %1704 }
 0x1ce   :  { %v367_v57 = vpack.c.bf16 %v1705_v56, %v1705_v56  ;;  %v1707_v58 = vpop.eup %1706 }
 0x1cf   :  { %v413_v59 = vpack.c.bf16 %v1707_v58, %v1707_v58 }
 0x1d0   :  { %1487 = vmatmul.mubr.msk.bf16.vlgmr.msra.gmra.mrb[8].mxu1 %vm163_vm2, %v367_v57 }
 0x1d1   :  { %1491 = vmatpush3.bf16.msra.mxu1 %v1829_v13  ;;  %1494 = vmatprep.mubr.msk.bf16.mxu1 %vm1735_vm0, %v1734_v0 }
 0x1d2   :  { %1492 = vmatprep.subr.bf16.mxu1 %v1734_v0 }
 0x1d5   :  { %1493 = vmatpush3.bf16.msra.mxu1 %v1854_v18 }
 0x1d6   :  { %1498 = vmatprep.subr.bf16.mxu1 %v1734_v0 }
 0x1d8   :  { %1495 = vmatmul.mubr.msk.bf16.vlgmr.msra.gmra.mrb[12].mxu1 %vm163_vm2, %v413_v59 }
 0x1d9   :  { %1499 = vmatpush3.bf16.msra.mxu1 %v1863_v19  ;;  %1502 = vmatprep.mubr.msk.bf16.mxu1 %vm1735_vm0, %v1734_v0 }
 0x1da   :  { %1500 = vmatprep.subr.bf16.mxu1 %v1734_v0 }
 0x1dd   :  { %1501 = vmatpush3.bf16.msra.mxu1 %v1870_v20 }
 0x1de   :  { %1530 = vmatprep.subr.bf16.mxu1 %v1734_v0 }
 0x1e4   :  { %1503 = vmatmul.mubr.msk.bf16.vlgmr.msra.gmra.mrb[12].mxu1 %vm163_vm2, %v367_v57 }
 0x1e5   :  { %1531 = vmatpush3.bf16.msra.mxu1 %v1796_v2  ;;  %1534 = vmatprep.mubr.msk.bf16.mxu1 %vm1735_vm0, %v1734_v0 }
 0x1e6   :  { %1532 = vmatprep.subr.bf16.mxu1 %v1734_v0 }
 0x1e9   :  { %1533 = vmatpush3.bf16.msra.mxu1 %v1815_v9 }
 0x1ea   :  { %1538 = vmatprep.subr.bf16.mxu1 %v1734_v0 }
 0x2a3   :  { %v405_v60 = vpop.f32.mrb[8].mxu1 }
 0x2a4   :  { %v411_v61 = vadd.f32 %v405_v60, %v1877_v23  ;;  %v1488_v62 = vpop.f32.mrb[9].mxu1 }
 0x2a5   :  { %v408_v63 = vpop.f32.mrb[10].mxu1 }
 0x2a6   :  { %1708 = vtanh.f32 %v411_v61  ;;  %v1489_v1 = vpop.f32.mrb[11].mxu1 }
 0x2b0   :  { %v1709_v3 = vpop.eup %1708 }
 0x2b1   :  { %v499_v4 = vpack.c.bf16 %v1709_v3, %v1709_v3 }
 0x2b3   :  { %1511 = vmatmul.mubr.msk.bf16.vlgmr.msra.gmra.mrb[12].mxu0 %vm163_vm2, %v499_v4 }
 0x2b4   :  { %1515 = vmatpush3.bf16.msra.mxu0 %v1829_v13  ;;  %1518 = vmatprep.mubr.msk.bf16.mxu0 %vm1735_vm0, %v1734_v0 }
 0x2b5   :  { %1516 = vmatprep.subr.bf16.mxu0 %v1734_v0 }
 0x2b7   :  { %v491_v5 = vpop.f32.mrb[12].mxu1 }
 0x2b8   :  { %v492_v6 = vadd.f32 %v1906_v50, %v491_v5  ;;  %v1504_v7 = vpop.f32.mrb[13].mxu1  ;;  %1517 = vmatpush3.bf16.msra.mxu0 %v1854_v18 }
 0x2b9   :  { %v494_v8 = vpop.f32.mrb[14].mxu1  ;;  %1522 = vmatprep.subr.bf16.mxu0 %v1734_v0 }
 0x2ba   :  { %1710 = vtanh.f32 %v492_v6  ;;  %v1505_v10 = vpop.f32.mrb[15].mxu1 }
 0x2c4   :  { %v1711_v11 = vpop.eup %1710 }
 0x2c5   :  { %v545_v12 = vpack.c.bf16 %v1711_v11, %v1711_v11 }
 0x2c7   :  { %1519 = vmatmul.mubr.msk.bf16.vlgmr.msra.gmra.mrb[16].mxu0 %vm163_vm2, %v545_v12 }
 0x2c8   :  { %1523 = vmatpush3.bf16.msra.mxu0 %v1863_v19  ;;  %1526 = vmatprep.mubr.msk.bf16.mxu0 %vm1735_vm0, %v1734_v0 }
 0x2c9   :  { %1524 = vmatprep.subr.bf16.mxu0 %v1734_v0 }
 0x2cc   :  { %1525 = vmatpush3.bf16.msra.mxu0 %v1870_v20 }
 0x2cd   :  { %1554 = vmatprep.subr.bf16.mxu0 %v1734_v0 }
 0x2d3   :  { %1527 = vmatmul.mubr.msk.bf16.vlgmr.msra.gmra.mrb[16].mxu0 %vm163_vm2, %v499_v4 }
 0x2d4   :  { %1555 = vmatpush3.bf16.msra.mxu0 %v1796_v2  ;;  %1558 = vmatprep.mubr.msk.bf16.mxu0 %vm1735_vm0, %v1734_v0 }
 0x2d5   :  { %1556 = vmatprep.subr.bf16.mxu0 %v1734_v0 }
 0x2d8   :  { %1557 = vmatpush3.bf16.msra.mxu0 %v1815_v9 }
 0x2d9   :  { %1562 = vmatprep.subr.bf16.mxu0 %v1734_v0 }
 0x386   :  { %v537_v14 = vpop.f32.mrb[12].mxu0 }
 0x387   :  { %v543_v15 = vadd.f32 %v537_v14, %v1879_v27  ;;  %v1512_v16 = vpop.f32.mrb[13].mxu0 }
 0x388   :  { %v540_v17 = vpop.f32.mrb[14].mxu0 }
 0x389   :  { %1712 = vtanh.f32 %v543_v15  ;;  %v1513_v21 = vpop.f32.mrb[15].mxu0 }
 0x393   :  { %v1713_v22 = vpop.eup %1712 }
 0x394   :  { %v631_v23 = vpack.c.bf16 %v1713_v22, %v1713_v22 }
 0x396   :  { %1535 = vmatmul.mubr.msk.bf16.vlgmr.msra.gmra.mrb[16].mxu1 %vm163_vm2, %v631_v23 }
 0x397   :  { %1539 = vmatpush3.bf16.msra.mxu1 %v1829_v13  ;;  %1542 = vmatprep.mubr.msk.bf16.mxu1 %vm1735_vm0, %v1734_v0 }
 0x398   :  { %1540 = vmatprep.subr.bf16.mxu1 %v1734_v0 }
 0x39b   :  { %1541 = vmatpush3.bf16.msra.mxu1 %v1854_v18 }
 0x39c   :  { %1546 = vmatprep.subr.bf16.mxu1 %v1734_v0 }
 0x3a6   :  { %v623_v24 = vpop.f32.mrb[16].mxu0 }
 0x3a7   :  { %v624_v25 = vadd.f32 %v1906_v50, %v623_v24  ;;  %v1528_v26 = vpop.f32.mrb[17].mxu0 }
 0x3a8   :  { %v626_v27 = vpop.f32.mrb[18].mxu0 }
 0x3a9   :  { %1714 = vtanh.f32 %v624_v25  ;;  %v1529_v28 = vpop.f32.mrb[19].mxu0  ;;  %v1700_v27 = vld [vmem:[%s2072_s7] sm:$0xff]  }
 0x3b3   :  { %v1715_v29 = vpop.eup %1714 }
 0x3b4   :  { %v677_v30 = vpack.c.bf16 %v1715_v29, %v1715_v29 }
 0x3b6   :  { %1543 = vmatmul.mubr.msk.bf16.vlgmr.msra.gmra.mrb[20].mxu1 %vm163_vm2, %v677_v30 }
 0x3b7   :  { %1547 = vmatpush3.bf16.msra.mxu1 %v1863_v19  ;;  %1550 = vmatprep.mubr.msk.bf16.mxu1 %vm1735_vm0, %v1734_v0 }
 0x3b8   :  { %1548 = vmatprep.subr.bf16.mxu1 %v1734_v0 }
 0x3bb   :  { %1549 = vmatpush3.bf16.msra.mxu1 %v1870_v20 }
 0x3bc   :  { %1578 = vmatprep.subr.bf16.mxu1 %v1734_v0 }
 0x3c2   :  { %1551 = vmatmul.mubr.msk.bf16.vlgmr.msra.gmra.mrb[20].mxu1 %vm163_vm2, %v631_v23 }
 0x3c3   :  { %1579 = vmatpush3.bf16.msra.mxu1 %v1796_v2  ;;  %1582 = vmatprep.mubr.msk.bf16.mxu1 %vm1735_vm0, %v1734_v0 }
 0x3c4   :  { %1580 = vmatprep.subr.bf16.mxu1 %v1734_v0 }
 0x3c7   :  { %1581 = vmatpush3.bf16.msra.mxu1 %v1815_v9 }
 0x3c8   :  { %1586 = vmatprep.subr.bf16.mxu1 %v1734_v0 }
 0x469   :  { %v669_v31 = vpop.f32.mrb[16].mxu1 }
 0x46a   :  { %v675_v32 = vadd.f32 %v669_v31, %v1883_v38  ;;  %v1536_v33 = vpop.f32.mrb[17].mxu1 }
 0x46b   :  { %v672_v34 = vpop.f32.mrb[18].mxu1 }
 0x46c   :  { %1716 = vtanh.f32 %v675_v32  ;;  %v1537_v35 = vpop.f32.mrb[19].mxu1 }
 0x476   :  { %v1717_v37 = vpop.eup %1716 }
 0x477   :  { %v763_v39 = vpack.c.bf16 %v1717_v37, %v1717_v37 }
 0x479   :  { %1559 = vmatmul.mubr.msk.bf16.vlgmr.msra.gmra.mrb[20].mxu0 %vm163_vm2, %v763_v39 }
 0x47a   :  { %1563 = vmatpush3.bf16.msra.mxu0 %v1829_v13  ;;  %1566 = vmatprep.mubr.msk.bf16.mxu0 %vm1735_vm0, %v1734_v0 }
 0x47b   :  { %1564 = vmatprep.subr.bf16.mxu0 %v1734_v0 }
 0x47e   :  { %1565 = vmatpush3.bf16.msra.mxu0 %v1854_v18 }
 0x47f   :  { %1570 = vmatprep.subr.bf16.mxu0 %v1734_v0 }
 0x495   :  { %v755_v38 = vpop.f32.mrb[20].mxu1 }
 0x496   :  { %v756_v41 = vadd.f32 %v1906_v50, %v755_v38  ;;  %v1552_v43 = vpop.f32.mrb[21].mxu1 }
 0x497   :  { %v758_v44 = vpop.f32.mrb[22].mxu1 }
 0x498   :  { %1718 = vtanh.f32 %v756_v41  ;;  %v1553_v45 = vpop.f32.mrb[23].mxu1 }
 0x4a2   :  { %v1719_v46 = vpop.eup %1718 }
 0x4a3   :  { %v809_v47 = vpack.c.bf16 %v1719_v46, %v1719_v46 }
 0x4a5   :  { %1567 = vmatmul.mubr.msk.bf16.vlgmr.msra.gmra.mrb[24].mxu0 %vm163_vm2, %v809_v47 }
 0x4a6   :  { %1571 = vmatpush3.bf16.msra.mxu0 %v1863_v19  ;;  %1574 = vmatprep.mubr.msk.bf16.mxu0 %vm1735_vm0, %v1734_v0 }
 0x4a7   :  { %1572 = vmatprep.subr.bf16.mxu0 %v1734_v0 }
 0x4aa   :  { %1573 = vmatpush3.bf16.msra.mxu0 %v1870_v20 }
 0x4ab   :  { %1602 = vmatprep.subr.bf16.mxu0 %v1734_v0 }
 0x4b1   :  { %1575 = vmatmul.mubr.msk.bf16.vlgmr.msra.gmra.mrb[24].mxu0 %vm163_vm2, %v763_v39 }
 0x4b2   :  { %1603 = vmatpush3.bf16.msra.mxu0 %v1796_v2  ;;  %1606 = vmatprep.mubr.msk.bf16.mxu0 %vm1735_vm0, %v1734_v0 }
 0x4b3   :  { %1604 = vmatprep.subr.bf16.mxu0 %v1734_v0 }
 0x4b6   :  { %1605 = vmatpush3.bf16.msra.mxu0 %v1815_v9 }
 0x4b7   :  { %1610 = vmatprep.subr.bf16.mxu0 %v1734_v0 }
 0x54c   :  { %v801_v48 = vpop.f32.mrb[20].mxu0 }
 0x54d   :  { %v807_v49 = vadd.f32 %v801_v48, %v1887_v42  ;;  %v1560_v51 = vpop.f32.mrb[21].mxu0 }
 0x54e   :  { %v804_v52 = vpop.f32.mrb[22].mxu0 }
 0x54f   :  { %1720 = vtanh.f32 %v807_v49  ;;  %v1561_v53 = vpop.f32.mrb[23].mxu0 }
 0x559   :  { %v1721_v54 = vpop.eup %1720 }
 0x55a   :  { %v895_v55 = vpack.c.bf16 %v1721_v54, %v1721_v54 }
 0x55c   :  { %1583 = vmatmul.mubr.msk.bf16.vlgmr.msra.gmra.mrb[24].mxu1 %vm163_vm2, %v895_v55 }
 0x55d   :  { %1587 = vmatpush3.bf16.msra.mxu1 %v1829_v13  ;;  %1590 = vmatprep.mubr.msk.bf16.mxu1 %vm1735_vm0, %v1734_v0 }
 0x55e   :  { %1588 = vmatprep.subr.bf16.mxu1 %v1734_v0 }
 0x561   :  { %1589 = vmatpush3.bf16.msra.mxu1 %v1854_v18 }
 0x562   :  { %1594 = vmatprep.subr.bf16.mxu1 %v1734_v0 }
 0x584   :  { %v887_v2 = vpop.f32.mrb[24].mxu0 }
 0x585   :  { %v888_v9 = vadd.f32 %v1906_v50, %v887_v2  ;;  %v1576_v42 = vpop.f32.mrb[25].mxu0 }
 0x586   :  { %v890_v56 = vpop.f32.mrb[26].mxu0 }
 0x587   :  { %1722 = vtanh.f32 %v888_v9  ;;  %v1577_v57 = vpop.f32.mrb[27].mxu0 }
 0x591   :  { %v1723_v58 = vpop.eup %1722 }
 0x592   :  { %v941_v59 = vpack.c.bf16 %v1723_v58, %v1723_v58 }
 0x594   :  { %1591 = vmatmul.mubr.msk.bf16.vlgmr.msra.gmra.mrb[28].mxu1 %vm163_vm2, %v941_v59 }
 0x595   :  { %1595 = vmatpush3.bf16.msra.mxu1 %v1863_v19  ;;  %1598 = vmatprep.mubr.msk.bf16.mxu1 %vm1735_vm0, %v1734_v0 }
 0x596   :  { %1596 = vmatprep.subr.bf16.mxu1 %v1734_v0 }
 0x599   :  { %1597 = vmatpush3.bf16.msra.mxu1 %v1870_v20 }
 0x59a   :  { %1626 = vmatprep.subr.bf16.mxu1 %v1734_v0 }
 0x5a0   :  { %1599 = vmatmul.mubr.msk.bf16.vlgmr.msra.gmra.mrb[28].mxu1 %vm163_vm2, %v895_v55 }
 0x5a1   :  { %1627 = vmatpush3.bf16.msra.mxu1 %v1829_v13  ;;  %1630 = vmatprep.mubr.msk.bf16.mxu1 %vm1735_vm0, %v1734_v0 }
 0x5a2   :  { %1628 = vmatprep.subr.bf16.mxu1 %v1734_v0 }
 0x5a5   :  { %1629 = vmatpush3.bf16.msra.mxu1 %v1854_v18 }
 0x5a6   :  { %1634 = vmatprep.subr.bf16.mxu1 %v1734_v0 }
 0x62f   :  { %v933_v60 = vpop.f32.mrb[24].mxu1 }
 0x630   :  { %v939_v61 = vadd.f32 %v933_v60, %v1881_v36  ;;  %v1584_v62 = vpop.f32.mrb[25].mxu1 }
 0x631   :  { %v936_v63 = vpop.f32.mrb[26].mxu1 }
 0x632   :  { %1724 = vtanh.f32 %v939_v61  ;;  %v1585_v1 = vpop.f32.mrb[27].mxu1 }
 0x63c   :  { %v1725_v3 = vpop.eup %1724 }
 0x63d   :  { %v1027_v4 = vpack.c.bf16 %v1725_v3, %v1725_v3 }
 0x63f   :  { %1607 = vmatmul.mubr.msk.bf16.vlgmr.msra.gmra.mrb[28].mxu0 %vm163_vm2, %v1027_v4 }
 0x640   :  { %1611 = vmatpush3.bf16.msra.mxu0 %v1829_v13  ;;  %1614 = vmatprep.mubr.msk.bf16.mxu0 %vm1735_vm0, %v1734_v0 }
 0x641   :  { %1612 = vmatprep.subr.bf16.mxu0 %v1734_v0 }
 0x644   :  { %1613 = vmatpush3.bf16.msra.mxu0 %v1854_v18 }
 0x645   :  { %1618 = vmatprep.subr.bf16.mxu0 %v1734_v0 }
 0x673   :  { %v1019_v36 = vpop.f32.mrb[28].mxu1 }
 0x674   :  { %v1020_v5 = vadd.f32 %v1906_v50, %v1019_v36  ;;  %v1600_v6 = vpop.f32.mrb[29].mxu1 }
 0x675   :  { %v1022_v7 = vpop.f32.mrb[30].mxu1 }
 0x676   :  { %1726 = vtanh.f32 %v1020_v5  ;;  %v1601_v8 = vpop.f32.mrb[31].mxu1 }
 0x680   :  { %v1727_v10 = vpop.eup %1726 }
 0x681   :  { %v1073_v11 = vpack.c.bf16 %v1727_v10, %v1727_v10 }
 0x683   :  { %1615 = vmatmul.mubr.msk.bf16.vlgmr.msra.gmra.mrb[32].mxu0 %vm163_vm2, %v1073_v11 }
 0x684   :  { %1619 = vmatpush3.bf16.msra.mxu0 %v1863_v19  ;;  %1622 = vmatprep.mubr.msk.bf16.mxu0 %vm1735_vm0, %v1734_v0 }
 0x685   :  { %1620 = vmatprep.subr.bf16.mxu0 %v1734_v0 }
 0x688   :  { %1621 = vmatpush3.bf16.msra.mxu0 %v1870_v20 }
 0x689   :  { %1642 = vmatprep.subr.bf16.mxu0 %v1734_v0 }
 0x68f   :  { %1623 = vmatmul.mubr.msk.bf16.vlgmr.msra.gmra.mrb[32].mxu0 %vm163_vm2, %v1027_v4 }
 0x690   :  { %1646 = vmatprep.mubr.msk.bf16.mxu0 %vm1735_vm0, %v1734_v0  ;;  %1643 = vmatpush3.bf16.msra.mxu0 %v1700_v27 }
 0x691   :  { %1644 = vmatprep.subr.bf16.mxu0 %v1734_v0 }
 0x712   :  { %v1065_v13 = vpop.f32.mrb[28].mxu0 }
 0x713   :  { %v1071_v18 = vadd.f32 %v1065_v13, %v1885_v40  ;;  %v1608_v12 = vpop.f32.mrb[29].mxu0 }
 0x714   :  { %v1068_v14 = vpop.f32.mrb[30].mxu0 }
 0x715   :  { %v1609_v15 = vpop.f32.mrb[31].mxu0 }
 0x762   :  { %v1151_v16 = vpop.f32.mrb[32].mxu0 }
 0x763   :  { %v1152_v17 = vadd.f32 %v1906_v50, %v1151_v16  ;;  %v1624_v21 = vpop.f32.mrb[33].mxu0 }
 0x764   :  { %v1154_v22 = vpop.f32.mrb[34].mxu0 }
 0x765   :  { %1728 = vtanh.f32 %v1152_v17  ;;  %v1625_v23 = vpop.f32.mrb[35].mxu0 }
 0x766   :  { %1730 = vtanh.f32 %v1071_v18 }
 0x76f   :  { %v1729_v24 = vpop.eup %1728 }
 0x770   :  { %v1159_v25 = vpack.c.bf16 %v1729_v24, %v1729_v24  ;;  %v1731_v40 = vpop.eup %1730 }
 0x771   :  { %v1203_v26 = vpack.c.bf16 %v1731_v40, %v1731_v40 }
 0x772   :  { %1631 = vmatmul.mubr.msk.bf16.vlgmr.msra.gmra.mrb[32].mxu1 %vm163_vm2, %v1159_v25 }
 0x773   :  { %1635 = vmatpush3.bf16.msra.mxu1 %v1863_v19  ;;  %1638 = vmatprep.mubr.msk.bf16.mxu1 %vm1735_vm0, %v1734_v0  ;;  %v1701_v19 = vld [vmem:[%s2072_s7 + $0x8] sm:$0xff]  }
 0x774   :  { %1636 = vmatprep.subr.bf16.mxu1 %v1734_v0  ;;  %1645 = vmatpush3.bf16.msra.mxu0 %v1701_v19  ;;  %v1356_v0 = vld [vmem:[%s2073_s8] ss:$0 sm:$0xff] }
 0x777   :  { %1637 = vmatpush3.bf16.msra.mxu1 %v1870_v20 }
 0x77e   :  { %1639 = vmatmul.mubr.msk.bf16.vlgmr.msra.gmra.mrb[32].mxu1 %vm163_vm2, %v1203_v26 }
 0x851   :  { %v1241_v28 = vpop.f32.mrb[32].mxu1 }
 0x852   :  { %v1242_v29 = vadd.f32 %v1906_v50, %v1241_v28  ;;  %v1640_v20 = vpop.f32.mrb[33].mxu1 }
 0x853   :  { %v1244_v30 = vpop.f32.mrb[34].mxu1 }
 0x854   :  { %1732 = vtanh.f32 %v1242_v29  ;;  %v1641_v31 = vpop.f32.mrb[35].mxu1 }
 0x85e   :  { %v1733_v32 = vpop.eup %1732 }
 0x85f   :  { %v1249_v33 = vpack.c.bf16 %v1733_v32, %v1733_v32 }
 0x861   :  { %1647 = vmatmul.mubr.msk.bf16.vlgmr.msra.gmra.mrb[36].mxu0 %vm163_vm2, %v1249_v33 }
 0x934   :  { %v1310_v34 = vpop.f32.mrb[36].mxu0 }
 0x935   :  { %v1311_v35 = vadd.f32 %v1356_v0, %v1310_v34  ;;  %v1648_v37 = vpop.f32.mrb[37].mxu0 }
 0x936   :  { %v1313_v39 = vpop.f32.mrb[38].mxu0 }
 0x937   :  { %1316 = vst [vmem:[%s2074_s9] sm:$0xff] %v1311_v35  ;;  %v1649_v50 = vpop.f32.mrb[39].mxu0 }

</bundles_post_ra>
